<compile_context>
chip_gen: v7x
topology: tpu7x:2x2x1
jax: 0.10.0
libtpu: 0.0.40
codegen_flags: <defaults>
</compile_context>

<pallas_src>
import functools
import math

import jax
import jax.numpy as jnp
from jax.experimental import pallas as pl
from jax.experimental.pallas import tpu as pltpu


def _round_up(x, m):
    return ((x + m - 1) // m) * m


# ---------------------------------------------------------------------------
# Kernel 1: fused QKV projection  ->  (3, t_pad, d_out_p) bf16 slab
# ---------------------------------------------------------------------------
def _qkv_proj_kernel(x_ref, w_ref, qkv_ref):
    # x: (t_tile, d_in_p) bf16; w: (3, d_in_p, d_out_p) bf16 (grid-invariant,
    # softmax scale folded into w[0]); qkv: (3, t_tile, d_out_p) bf16.
    x = x_ref[...]
    for t in range(3):                      # static unroll: Q / K / V
        qkv_ref[t] = jnp.dot(
            x, w_ref[t], preferred_element_type=jnp.float32
        ).astype(qkv_ref.dtype)


# ---------------------------------------------------------------------------
# Kernel 2: flash attention (online softmax, no causal mask)
# ---------------------------------------------------------------------------
def _flash_attn_kernel(q_ref, k_ref, v_ref, o_ref, m_sc, l_sc, acc_sc,
                       *, seq_len, tk, mask_keys):
    ki = pl.program_id(1)

    @pl.when(ki == 0)
    def _init():
        m_sc[...] = jnp.full_like(m_sc, -jnp.inf)
        l_sc[...] = jnp.zeros_like(l_sc)
        acc_sc[...] = jnp.zeros_like(acc_sc)

    q = q_ref[0]            # (tq, d_out_p) bf16, scale already folded into Wq
    k = k_ref[0]            # (tk, d_out_p) bf16

    # Scores: contract head dims directly (no explicit k.T); bf16 in, f32 acc.
    s = jax.lax.dot_general(
        q, k, (((1,), (1,)), ((), ())), preferred_element_type=jnp.float32)

    if mask_keys:
        # Cheap (1, tk) additive bias row: 0 for real keys, -1e30 for padding.
        # Only non-zero on the last kv tile; emitted only when padding exists.
        key_idx = ki * tk + jax.lax.broadcasted_iota(jnp.int32, (1, tk), 1)
        bias = jnp.where(key_idx < seq_len, 0.0, -1e30).astype(jnp.float32)
        s = s + bias

    m_prev = m_sc[...]
    m_new = jnp.maximum(m_prev, jnp.max(s, axis=-1, keepdims=True))
    alpha = jnp.exp(m_prev - m_new)          # f32 elementwise (v5e-safe)
    p = jnp.exp(s - m_new)

    l_sc[...] = alpha * l_sc[...] + jnp.sum(p, axis=-1, keepdims=True)
    acc_sc[...] = alpha * acc_sc[...] + jnp.dot(
        p.astype(v_ref.dtype), v_ref[0], preferred_element_type=jnp.float32)
    m_sc[...] = m_new

    @pl.when(ki == pl.num_programs(1) - 1)
    def _finalize():
        inv_l = pl.reciprocal(l_sc[...], approx=True)   # EUP, off the VALU path
        o_ref[...] = (acc_sc[...] * inv_l).astype(o_ref.dtype)


# ---------------------------------------------------------------------------
# Wrapper
# ---------------------------------------------------------------------------
@jax.jit
def self_attention(x, w_query, w_key, w_value):
    """Forward of SelfAttention.

    x: (T, d_in); w_*: (d_out, d_in) in torch.nn.Linear layout (no bias).
    """
    T, d_in = x.shape
    d_out = w_query.shape[0]
    out_dtype = x.dtype
    scale = 1.0 / math.sqrt(d_out)           # reference divides by sqrt(d_out)

    d_in_p = _round_up(d_in, 128)
    d_out_p = _round_up(d_out, 128)

    # ---- tile / padding selection (lane-dense, v7x dual-TC aware) ---------
    t8 = _round_up(T, 8)
    if t8 <= 256:
        tq = tk = t_pad = t8                 # single tile each way
    else:
        tk = 256
        # tq=512 cuts K/V HBM re-reads on long sequences; keep >=2 q tiles
        # (v7x has 2 TensorCores) for shorter ones.
        tq = 512 if t8 > 1024 else 256
        t_pad = _round_up(t8, tq)            # tq is a multiple of tk
    nq, nk = t_pad // tq, t_pad // tk

    # ---- pad + cast inputs (bf16 data path, f32 accumulation) -------------
    x_p = jnp.pad(x, ((0, t_pad - T), (0, d_in_p - d_in))).astype(jnp.bfloat16)

    def _prep_w(w, s=1.0):                   # (d_out, d_in) -> (d_in_p, d_out_p)
        wt = (w.astype(jnp.float32) * s).T
        return jnp.pad(wt, ((0, d_in_p - d_in), (0, d_out_p - d_out)))

    # Softmax scale folded into Wq. NOTE: if weights are static across calls,
    # hoist/cache this prep (and the bf16 cast) outside the per-call path.
    w_fused = jnp.stack(
        [_prep_w(w_query, scale), _prep_w(w_key), _prep_w(w_value)], axis=0
    ).astype(jnp.bfloat16)                   # (3, d_in_p, d_out_p)

    # ---------------------- 1) fused QKV projection ------------------------
    proj_cost = pl.CostEstimate(
        flops=2 * t_pad * d_in_p * 3 * d_out_p,
        transcendentals=0,
        bytes_accessed=2 * (t_pad * d_in_p + 3 * d_in_p * d_out_p
                            + 3 * t_pad * d_out_p))
    qkv = pl.pallas_call(
        _qkv_proj_kernel,
        out_shape=jax.ShapeDtypeStruct((3, t_pad, d_out_p), jnp.bfloat16),
        grid_spec=pltpu.PrefetchScalarGridSpec(
            num_scalar_prefetch=0,
            grid=(nq,),
            in_specs=[
                pl.BlockSpec((tq, d_in_p), lambda i: (i, 0)),
                # Grid-invariant weight (constant block index -> fetched once).
                pl.BlockSpec((3, d_in_p, d_out_p), lambda i: (0, 0, 0)),
            ],
            out_specs=pl.BlockSpec((3, tq, d_out_p), lambda i: (0, i, 0)),
        ),
        compiler_params=pltpu.CompilerParams(
            dimension_semantics=("parallel",)),
        cost_estimate=proj_cost,
    )(x_p, w_fused)

    # ---------------------- 2) flash attention -----------------------------
    kernel = functools.partial(
        _flash_attn_kernel, seq_len=T, tk=tk, mask_keys=(t_pad != T))
    attn_cost = pl.CostEstimate(
        flops=4 * t_pad * t_pad * d_out_p,
        transcendentals=t_pad * t_pad,
        bytes_accessed=2 * (t_pad * d_out_p + 2 * nq * t_pad * d_out_p)
                       + 4 * t_pad * d_out_p)

    out_p = pl.pallas_call(
        kernel,
        out_shape=jax.ShapeDtypeStruct((t_pad, d_out_p), out_dtype),
        grid_spec=pltpu.PrefetchScalarGridSpec(
            num_scalar_prefetch=0,
            grid=(nq, nk),
            in_specs=[
                # Leading block index (0/1/2) selects the contiguous Q/K/V slab.
                pl.BlockSpec((1, tq, d_out_p), lambda qi, ki: (0, qi, 0)),  # Q
                pl.BlockSpec((1, tk, d_out_p), lambda qi, ki: (1, ki, 0)),  # K
                pl.BlockSpec((1, tk, d_out_p), lambda qi, ki: (2, ki, 0)),  # V
            ],
            out_specs=pl.BlockSpec((tq, d_out_p), lambda qi, ki: (qi, 0)),
            scratch_shapes=[
                pltpu.VMEM((tq, 1), jnp.float32),        # running max  m
                pltpu.VMEM((tq, 1), jnp.float32),        # running sum  l
                pltpu.VMEM((tq, d_out_p), jnp.float32),  # output accumulator
            ],
        ),
        compiler_params=pltpu.CompilerParams(
            dimension_semantics=("parallel", "arbitrary")),
        cost_estimate=attn_cost,
    )(qkv, qkv, qkv)

    return out_p[:T, :d_out].astype(out_dtype)


def self_attention_ref(x, w_query, w_key, w_value):
    q = x @ w_query.T
    k = x @ w_key.T
    v = x @ w_value.T
    scores = q @ k.T / (k.shape[-1] ** 0.5)
    attn = jax.nn.softmax(scores, axis=-1)
    return attn @ v


if __name__ == "__main__":
    key = jax.random.PRNGKey(0)

    # Small shapes implied by the module: inputs is (6, 3); pick d_out=32.
    T, d_in, d_out = 6, 3, 32
    kx, kq, kk, kv = jax.random.split(key, 4)
    x = jax.random.uniform(kx, (T, d_in), dtype=jnp.float32)
    w_query = jax.random.normal(kq, (d_out, d_in), dtype=jnp.float32) * 0.1
    w_key = jax.random.normal(kk, (d_out, d_in), dtype=jnp.float32) * 0.1
    w_value = jax.random.normal(kv, (d_out, d_in), dtype=jnp.float32) * 0.1

    out = self_attention(x, w_query, w_key, w_value)
    jax.block_until_ready(out)
    ref = self_attention_ref(x, w_query, w_key, w_value)
    assert out.shape == (T, d_out)
    # bf16 matmuls with f32 accumulation -> small drift vs the f32 reference.
    assert jnp.allclose(out, ref, atol=1e-2, rtol=1e-2), \
        float(jnp.max(jnp.abs(out - ref)))

    # Second check: multi-tile online-softmax path + key-padding mask + v7x
    # 2-tile parallel q axis (T=300 -> t_pad=512, tq=tk=256, grid (2, 2)).
    T2, d_in2, d_out2 = 300, 48, 64
    kx2, kq2, kk2, kv2 = jax.random.split(jax.random.PRNGKey(1), 4)
    x2 = jax.random.normal(kx2, (T2, d_in2), dtype=jnp.float32)
    wq2 = jax.random.normal(kq2, (d_out2, d_in2), dtype=jnp.float32) * 0.1
    wk2 = jax.random.normal(kk2, (d_out2, d_in2), dtype=jnp.float32) * 0.1
    wv2 = jax.random.normal(kv2, (d_out2, d_in2), dtype=jnp.float32) * 0.1

    out2 = self_attention(x2, wq2, wk2, wv2)
    jax.block_until_ready(out2)
    ref2 = self_attention_ref(x2, wq2, wk2, wv2)
    assert out2.shape == (T2, d_out2)
    assert jnp.allclose(out2, ref2, atol=1e-2, rtol=1e-2), \
        float(jnp.max(jnp.abs(out2 - ref2)))

    print("KERNEL_OK")
</pallas_src>

<mosaic_0001>
module attributes {stable_mosaic.version = 11 : i64} {
  func.func @_qkv_proj_kernel(%arg0: i32, %arg1: memref<8x128xbf16, #tpu.memory_space<vmem>>, %arg2: memref<3x128x128xbf16, #tpu.memory_space<vmem>>, %arg3: memref<3x8x128xbf16, #tpu.memory_space<vmem>>) attributes {dimension_semantics = [#tpu.dimension_semantics<parallel>], iteration_bounds = array<i64: 1>, scalar_prefetch = 0 : i64, scratch_operands = 0 : i64, tpu.core_type = #tpu.core_type<tc>, window_params = [{transform_indices = @transform_0, window_bounds = array<i64: 8, 128>}, {pipeline_mode = #tpu.pipeline_mode<synchronous>, transform_indices = @transform_1, window_bounds = array<i64: 3, 128, 128>}, {transform_indices = @transform_2, window_bounds = array<i64: 3, 8, 128>}]} {
    %c0 = arith.constant 0 : index
    %c0_0 = arith.constant 0 : index
    %0 = vector.load %arg1[%c0, %c0_0] : memref<8x128xbf16, #tpu.memory_space<vmem>>, vector<8x128xbf16>
    %c0_1 = arith.constant 0 : index
    %c0_2 = arith.constant 0 : index
    %c0_3 = arith.constant 0 : index
    %1 = vector.load %arg2[%c0_1, %c0_2, %c0_3] : memref<3x128x128xbf16, #tpu.memory_space<vmem>>, vector<1x128x128xbf16>
    %2 = vector.shape_cast %1 : vector<1x128x128xbf16> to vector<128x128xbf16>
    %cst = arith.constant dense<0.000000e+00> : vector<8x128xf32>
    %3 = tpu.matmul %0, %2, %cst {dimension_numbers = #tpu.dot_dimension_numbers<[1], [0], [0], [1], [0, 0, 1, 1], [], []>} : vector<8x128xbf16>, vector<128x128xbf16>, vector<8x128xf32> -> vector<8x128xf32>
    %4 = arith.truncf %3 : vector<8x128xf32> to vector<8x128xbf16>
    %c0_4 = arith.constant 0 : index
    %c0_5 = arith.constant 0 : index
    %c0_6 = arith.constant 0 : index
    %5 = vector.load %arg3[%c0_4, %c0_5, %c0_6] : memref<3x8x128xbf16, #tpu.memory_space<vmem>>, vector<1x8x128xbf16>
    %6 = vector.shape_cast %5 : vector<1x8x128xbf16> to vector<8x128xbf16>
    %7 = vector.shape_cast %4 : vector<8x128xbf16> to vector<1x8x128xbf16>
    tpu.vector_store %arg3[%c0_4, %c0_5, %c0_6], %7 {strides = array<i32>} : memref<3x8x128xbf16, #tpu.memory_space<vmem>>, vector<1x8x128xbf16>,
    %c1 = arith.constant 1 : index
    %c0_7 = arith.constant 0 : index
    %c0_8 = arith.constant 0 : index
    %8 = vector.load %arg2[%c1, %c0_7, %c0_8] : memref<3x128x128xbf16, #tpu.memory_space<vmem>>, vector<1x128x128xbf16>
    %9 = vector.shape_cast %8 : vector<1x128x128xbf16> to vector<128x128xbf16>
    %cst_9 = arith.constant dense<0.000000e+00> : vector<8x128xf32>
    %10 = tpu.matmul %0, %9, %cst_9 {dimension_numbers = #tpu.dot_dimension_numbers<[1], [0], [0], [1], [0, 0, 1, 1], [], []>} : vector<8x128xbf16>, vector<128x128xbf16>, vector<8x128xf32> -> vector<8x128xf32>
    %11 = arith.truncf %10 : vector<8x128xf32> to vector<8x128xbf16>
    %c1_10 = arith.constant 1 : index
    %c0_11 = arith.constant 0 : index
    %c0_12 = arith.constant 0 : index
    %12 = vector.load %arg3[%c1_10, %c0_11, %c0_12] : memref<3x8x128xbf16, #tpu.memory_space<vmem>>, vector<1x8x128xbf16>
    %13 = vector.shape_cast %12 : vector<1x8x128xbf16> to vector<8x128xbf16>
    %14 = vector.shape_cast %11 : vector<8x128xbf16> to vector<1x8x128xbf16>
    tpu.vector_store %arg3[%c1_10, %c0_11, %c0_12], %14 {strides = array<i32>} : memref<3x8x128xbf16, #tpu.memory_space<vmem>>, vector<1x8x128xbf16>,
    %c2 = arith.constant 2 : index
    %c0_13 = arith.constant 0 : index
    %c0_14 = arith.constant 0 : index
    %15 = vector.load %arg2[%c2, %c0_13, %c0_14] : memref<3x128x128xbf16, #tpu.memory_space<vmem>>, vector<1x128x128xbf16>
    %16 = vector.shape_cast %15 : vector<1x128x128xbf16> to vector<128x128xbf16>
    %cst_15 = arith.constant dense<0.000000e+00> : vector<8x128xf32>
    %17 = tpu.matmul %0, %16, %cst_15 {dimension_numbers = #tpu.dot_dimension_numbers<[1], [0], [0], [1], [0, 0, 1, 1], [], []>} : vector<8x128xbf16>, vector<128x128xbf16>, vector<8x128xf32> -> vector<8x128xf32>
    %18 = arith.truncf %17 : vector<8x128xf32> to vector<8x128xbf16>
    %c2_16 = arith.constant 2 : index
    %c0_17 = arith.constant 0 : index
    %c0_18 = arith.constant 0 : index
    %19 = vector.load %arg3[%c2_16, %c0_17, %c0_18] : memref<3x8x128xbf16, #tpu.memory_space<vmem>>, vector<1x8x128xbf16>
    %20 = vector.shape_cast %19 : vector<1x8x128xbf16> to vector<8x128xbf16>
    %21 = vector.shape_cast %18 : vector<8x128xbf16> to vector<1x8x128xbf16>
    tpu.vector_store %arg3[%c2_16, %c0_17, %c0_18], %21 {strides = array<i32>} : memref<3x8x128xbf16, #tpu.memory_space<vmem>>, vector<1x8x128xbf16>,
    return
  }
  func.func @transform_0(%arg0: i32) -> (i32, i32) {
    %c0_i32 = arith.constant 0 : i32
    %c0_i32_0 = arith.constant 0 : i32
    return %arg0, %c0_i32 : i32, i32
  }
  func.func @transform_1(%arg0: i32) -> (i32, i32, i32) {
    %c0_i32 = arith.constant 0 : i32
    %c0_i32_0 = arith.constant 0 : i32
    %c0_i32_1 = arith.constant 0 : i32
    %c0_i32_2 = arith.constant 0 : i32
    return %c0_i32, %c0_i32_0, %c0_i32_1 : i32, i32, i32
  }
  func.func @transform_2(%arg0: i32) -> (i32, i32, i32) {
    %c0_i32 = arith.constant 0 : i32
    %c0_i32_0 = arith.constant 0 : i32
    %c0_i32_1 = arith.constant 0 : i32
    return %c0_i32, %arg0, %c0_i32_0 : i32, i32, i32
  }
}

module attributes {stable_mosaic.version = 11 : i64} {
  func.func @_flash_attn_kernel(%arg0: i32, %arg1: i32, %arg2: memref<1x8x128xbf16, #tpu.memory_space<vmem>>, %arg3: memref<1x8x128xbf16, #tpu.memory_space<vmem>>, %arg4: memref<1x8x128xbf16, #tpu.memory_space<vmem>>, %arg5: memref<8x128xf32, #tpu.memory_space<vmem>>, %arg6: memref<8x1xf32, #tpu.memory_space<vmem>>, %arg7: memref<8x1xf32, #tpu.memory_space<vmem>>, %arg8: memref<8x128xf32, #tpu.memory_space<vmem>>) attributes {dimension_semantics = [#tpu.dimension_semantics<parallel>, #tpu.dimension_semantics<arbitrary>], iteration_bounds = array<i64: 1, 1>, scalar_prefetch = 0 : i64, scratch_operands = 3 : i64, tpu.core_type = #tpu.core_type<tc>, window_params = [{transform_indices = @transform_0, window_bounds = array<i64: 1, 8, 128>}, {transform_indices = @transform_1, window_bounds = array<i64: 1, 8, 128>}, {transform_indices = @transform_2, window_bounds = array<i64: 1, 8, 128>}, {transform_indices = @transform_3, window_bounds = array<i64: 8, 128>}]} {
    %c0_i32 = arith.constant 0 : i32
    %0 = arith.cmpi eq, %arg1, %c0_i32 : i32
    %1 = arith.extui %0 : i1 to i32
    %c0_i32_0 = arith.constant 0 : i32
    %2 = arith.cmpi ne, %1, %c0_i32_0 : i32
    scf.if %2 {
      %cst_28 = arith.constant 0xFF800000 : f32
      %47 = vector.broadcast %cst_28 : f32 to vector<8x1xf32>
      %c0_29 = arith.constant 0 : index
      %c0_30 = arith.constant 0 : index
      %48 = vector.load %arg6[%c0_29, %c0_30] : memref<8x1xf32, #tpu.memory_space<vmem>>, vector<8x1xf32>
      tpu.vector_store %arg6[%c0_29, %c0_30], %47 {strides = array<i32>} : memref<8x1xf32, #tpu.memory_space<vmem>>, vector<8x1xf32>,
      %cst_31 = arith.constant 0.000000e+00 : f32
      %49 = vector.broadcast %cst_31 : f32 to vector<8x1xf32>
      %c0_32 = arith.constant 0 : index
      %c0_33 = arith.constant 0 : index
      %50 = vector.load %arg7[%c0_32, %c0_33] : memref<8x1xf32, #tpu.memory_space<vmem>>, vector<8x1xf32>
      tpu.vector_store %arg7[%c0_32, %c0_33], %49 {strides = array<i32>} : memref<8x1xf32, #tpu.memory_space<vmem>>, vector<8x1xf32>,
      %cst_34 = arith.constant 0.000000e+00 : f32
      %51 = vector.broadcast %cst_34 : f32 to vector<8x128xf32>
      %c0_35 = arith.constant 0 : index
      %c0_36 = arith.constant 0 : index
      %52 = vector.load %arg8[%c0_35, %c0_36] : memref<8x128xf32, #tpu.memory_space<vmem>>, vector<8x128xf32>
      tpu.vector_store %arg8[%c0_35, %c0_36], %51 {strides = array<i32>} : memref<8x128xf32, #tpu.memory_space<vmem>>, vector<8x128xf32>,
    } else {
    }
    %c0 = arith.constant 0 : index
    %c0_1 = arith.constant 0 : index
    %c0_2 = arith.constant 0 : index
    %3 = vector.load %arg2[%c0, %c0_1, %c0_2] : memref<1x8x128xbf16, #tpu.memory_space<vmem>>, vector<1x8x128xbf16>
    %4 = vector.shape_cast %3 : vector<1x8x128xbf16> to vector<8x128xbf16>
    %c0_3 = arith.constant 0 : index
    %c0_4 = arith.constant 0 : index
    %c0_5 = arith.constant 0 : index
    %5 = vector.load %arg3[%c0_3, %c0_4, %c0_5] : memref<1x8x128xbf16, #tpu.memory_space<vmem>>, vector<1x8x128xbf16>
    %6 = vector.shape_cast %5 : vector<1x8x128xbf16> to vector<8x128xbf16>
    %cst = arith.constant dense<0.000000e+00> : vector<8x8xf32>
    %7 = tpu.matmul %4, %6, %cst {dimension_numbers = #tpu.dot_dimension_numbers<[1], [1], [0], [0], [0, 0, 1, 0], [], []>} : vector<8x128xbf16>, vector<8x128xbf16>, vector<8x8xf32> -> vector<8x8xf32>
    %c8_i32 = arith.constant 8 : i32
    %8 = arith.muli %arg1, %c8_i32 : i32
    %9 = tpu.iota {dimensions = array<i32: 1>} : vector<1x8xi32>
    %10 = vector.broadcast %8 : i32 to vector<1x8xi32>
    %11 = arith.addi %10, %9 : vector<1x8xi32>
    %c6_i32 = arith.constant 6 : i32
    %12 = vector.broadcast %c6_i32 : i32 to vector<1x8xi32>
    %13 = arith.cmpi slt, %11, %12 : vector<1x8xi32>
    %cst_6 = arith.constant 0.000000e+00 : f32
    %cst_7 = arith.constant -1.000000e+30 : f32
    %14 = vector.broadcast %cst_6 : f32 to vector<1x8xf32>
    %15 = vector.broadcast %cst_7 : f32 to vector<1x8xf32>
    %16 = arith.select %13, %14, %15 : vector<1x8xi1>, vector<1x8xf32>
    %17 = vector.broadcast %16 : vector<1x8xf32> to vector<8x8xf32>
    %18 = arith.addf %7, %17 : vector<8x8xf32>
    %c0_8 = arith.constant 0 : index
    %c0_9 = arith.constant 0 : index
    %19 = vector.load %arg6[%c0_8, %c0_9] : memref<8x1xf32, #tpu.memory_space<vmem>>, vector<8x1xf32>
    %cst_10 = arith.constant dense<0xFF800000> : vector<8xf32>
    %20 = vector.multi_reduction <maximumf>, %18, %cst_10 [1] : vector<8x8xf32> to vector<8xf32>
    %21 = vector.shape_cast %20 : vector<8xf32> to vector<8x1xf32>
    %22 = arith.maximumf %19, %21 : vector<8x1xf32>
    %23 = arith.subf %19, %22 : vector<8x1xf32>
    %24 = math.exp %23 : vector<8x1xf32>
    %25 = vector.broadcast %22 : vector<8x1xf32> to vector<8x8xf32>
    %26 = arith.subf %18, %25 : vector<8x8xf32>
    %27 = math.exp %26 : vector<8x8xf32>
    %c0_11 = arith.constant 0 : index
    %c0_12 = arith.constant 0 : index
    %28 = vector.load %arg7[%c0_11, %c0_12] : memref<8x1xf32, #tpu.memory_space<vmem>>, vector<8x1xf32>
    %29 = arith.mulf %24, %28 : vector<8x1xf32>
    %cst_13 = arith.constant dense<0.000000e+00> : vector<8xf32>
    %30 = vector.multi_reduction <add>, %27, %cst_13 [1] : vector<8x8xf32> to vector<8xf32>
    %31 = vector.shape_cast %30 : vector<8xf32> to vector<8x1xf32>
    %32 = arith.addf %29, %31 : vector<8x1xf32>
    %c0_14 = arith.constant 0 : index
    %c0_15 = arith.constant 0 : index
    %33 = vector.load %arg7[%c0_14, %c0_15] : memref<8x1xf32, #tpu.memory_space<vmem>>, vector<8x1xf32>
    tpu.vector_store %arg7[%c0_14, %c0_15], %32 {strides = array<i32>} : memref<8x1xf32, #tpu.memory_space<vmem>>, vector<8x1xf32>,
    %c0_16 = arith.constant 0 : index
    %c0_17 = arith.constant 0 : index
    %34 = vector.load %arg8[%c0_16, %c0_17] : memref<8x128xf32, #tpu.memory_space<vmem>>, vector<8x128xf32>
    %35 = vector.broadcast %24 : vector<8x1xf32> to vector<8x128xf32>
    %36 = arith.mulf %35, %34 : vector<8x128xf32>
    %37 = arith.truncf %27 : vector<8x8xf32> to vector<8x8xbf16>
    %c0_18 = arith.constant 0 : index
    %c0_19 = arith.constant 0 : index
    %c0_20 = arith.constant 0 : index
    %38 = vector.load %arg4[%c0_18, %c0_19, %c0_20] : memref<1x8x128xbf16, #tpu.memory_space<vmem>>, vector<1x8x128xbf16>
    %39 = vector.shape_cast %38 : vector<1x8x128xbf16> to vector<8x128xbf16>
    %cst_21 = arith.constant dense<0.000000e+00> : vector<8x128xf32>
    %40 = tpu.matmul %37, %39, %cst_21 {dimension_numbers = #tpu.dot_dimension_numbers<[1], [0], [0], [1], [0, 0, 1, 1], [], []>} : vector<8x8xbf16>, vector<8x128xbf16>, vector<8x128xf32> -> vector<8x128xf32>
    %41 = arith.addf %36, %40 : vector<8x128xf32>
    %c0_22 = arith.constant 0 : index
    %c0_23 = arith.constant 0 : index
    %42 = vector.load %arg8[%c0_22, %c0_23] : memref<8x128xf32, #tpu.memory_space<vmem>>, vector<8x128xf32>
    tpu.vector_store %arg8[%c0_22, %c0_23], %41 {strides = array<i32>} : memref<8x128xf32, #tpu.memory_space<vmem>>, vector<8x128xf32>,
    %c0_24 = arith.constant 0 : index
    %c0_25 = arith.constant 0 : index
    %43 = vector.load %arg6[%c0_24, %c0_25] : memref<8x1xf32, #tpu.memory_space<vmem>>, vector<8x1xf32>
    tpu.vector_store %arg6[%c0_24, %c0_25], %22 {strides = array<i32>} : memref<8x1xf32, #tpu.memory_space<vmem>>, vector<8x1xf32>,
    %c0_i32_26 = arith.constant 0 : i32
    %44 = arith.cmpi eq, %arg1, %c0_i32_26 : i32
    %45 = arith.extui %44 : i1 to i32
    %c0_i32_27 = arith.constant 0 : i32
    %46 = arith.cmpi ne, %45, %c0_i32_27 : i32
    scf.if %46 {
      %c0_28 = arith.constant 0 : index
      %c0_29 = arith.constant 0 : index
      %47 = vector.load %arg7[%c0_28, %c0_29] : memref<8x1xf32, #tpu.memory_space<vmem>>, vector<8x1xf32>
      %48 = tpu.reciprocal %47 {approx = true} : vector<8x1xf32> -> vector<8x1xf32>
      %c0_30 = arith.constant 0 : index
      %c0_31 = arith.constant 0 : index
      %49 = vector.load %arg8[%c0_30, %c0_31] : memref<8x128xf32, #tpu.memory_space<vmem>>, vector<8x128xf32>
      %50 = vector.broadcast %48 : vector<8x1xf32> to vector<8x128xf32>
      %51 = arith.mulf %49, %50 : vector<8x128xf32>
      %c0_32 = arith.constant 0 : index
      %c0_33 = arith.constant 0 : index
      %52 = vector.load %arg5[%c0_32, %c0_33] : memref<8x128xf32, #tpu.memory_space<vmem>>, vector<8x128xf32>
      tpu.vector_store %arg5[%c0_32, %c0_33], %51 {strides = array<i32>} : memref<8x128xf32, #tpu.memory_space<vmem>>, vector<8x128xf32>,
    } else {
    }
    return
  }
  func.func @transform_0(%arg0: i32, %arg1: i32) -> (i32, i32, i32) {
    %c0_i32 = arith.constant 0 : i32
    %c0_i32_0 = arith.constant 0 : i32
    %c0_i32_1 = arith.constant 0 : i32
    return %c0_i32, %arg0, %c0_i32_0 : i32, i32, i32
  }
  func.func @transform_1(%arg0: i32, %arg1: i32) -> (i32, i32, i32) {
    %c1_i32 = arith.constant 1 : i32
    %c0_i32 = arith.constant 0 : i32
    %c0_i32_0 = arith.constant 0 : i32
    return %c1_i32, %arg1, %c0_i32 : i32, i32, i32
  }
  func.func @transform_2(%arg0: i32, %arg1: i32) -> (i32, i32, i32) {
    %c2_i32 = arith.constant 2 : i32
    %c0_i32 = arith.constant 0 : i32
    %c0_i32_0 = arith.constant 0 : i32
    return %c2_i32, %arg1, %c0_i32 : i32, i32, i32
  }
  func.func @transform_3(%arg0: i32, %arg1: i32) -> (i32, i32) {
    %c0_i32 = arith.constant 0 : i32
    %c0_i32_0 = arith.constant 0 : i32
    return %arg0, %c0_i32 : i32, i32
  }
}

</mosaic_0001>

<bundles_post_ra>
// kernel: self_attention.3
= control target key start
LH: loop header
LB: loop body
LE: loop exit
PB: predicated region body
PF: predicated region fallthrough
CT: control target
= control target key end

     0   :  { %v247_v1 = vmov 0.0   ;;  %vm248_vm0 = vmmov 0   ;;  %s301_s0 = inlined_call_operand.vmem [shape: bf16[3,8,128], index: 0, kind: input, shape index: {}, may-alias: {0,1,2}]   ;;  %s302_s1 = inlined_call_operand.vmem [shape: bf16[3,8,128], index: 1, kind: input, shape index: {}, may-alias: {0,1,2}]   ;;  %s303_s2 = inlined_call_operand.vmem [shape: bf16[3,8,128], index: 2, kind: input, shape index: {}, may-alias: {0,1,2}]   ;;  %s304_s3 = inlined_call_operand.hbm [shape: f32[8,128], index: 3, kind: output, shape index: {}]  }
   0x1   :  { %v190_v0 = vld [vmem:[%s302_s1 + $0x4] sm:$0xf]  ;;  %197 = vmatprep.subr.bf16.mxu0 %v247_v1  ;;  %199 = vmatprep.mubr.msk.bf16.mxu0 %vm248_vm0, %v247_v1 }
   0x2   :  { %8 = vsyncpa [#allocation6], 0  ;;  %198 = vmatpush3.bf16.xpose.msra.mxu0 %v190_v0  ;;  %203 = vmatprep.subr.bf16.mxu1 %v247_v1  ;;  %v30_v2 = vld [vmem:[%s301_s0] sm:$0xf]  ;;  %v33_v3 = vlaneseq  ;;  %v249_v5 = vmov -1e+30  }
   0x3   :  { %205 = vmatprep.mubr.msk.bf16.mxu1 %vm248_vm0, %v247_v1  ;;  %vm80_vm2 = vcmask 64512   ;;  %vm26_vm3 = vcmask 7168   ;;  %v250_v13 = vmov -inf   ;;  %v251_v14 = vmov 0   ;;  %v191_v19 = vld [vmem:[%s303_s2 + $0x8] sm:$0xf] }
   0x4   :  { %v34_v4 = vand.u32 127, %v33_v3  ;;  %27 = vst.msk [vmem:[#allocation2] sm:$0xff] %vm26_vm3, %v250_v13  ;;  %28 = vst.msk [vmem:[#allocation3] sm:$0xff] %vm26_vm3, %v247_v1  ;;  %215 = vset.pattern.permute.xlu0 %v251_v14  ;;  %216 = vset.pattern.permute.xlu1 %v251_v14  ;;  %vm116_vm4 = vcmask 1043456   ;;  %s252_s2 = smov [#allocation5]  }
   0x5   :  { %v118_v20 = vsel %vm116_vm4, %v191_v19, 0  ;;  %s182_s16 = sshll.u32 %s252_s2, 4  ;;  %s183_s16 = int_to_ptr.vmem [resolvable:$true] %s182_s16 }
   0x6   :  { %vm37_vm1 = vcmp.lt.s32.totalorder %v34_v4, 6  ;;  %204 = vmatpush3.bf16.msra.mxu1 %v118_v20  ;;  %s223_s17 = scalar_lea.vmem %s183_s16, 128  ;;  %p228_p1 = scmp.lt.s32.totalorder %s183_s16, %s183_s16 }
   0x7   :  { %v38_v6 = vsel %vm37_vm1, 0.0, %v249_v5  ;;  %p224_p0 = scmp.ne.s32.totalorder %s183_s16, %s223_s17  ;;  %p229_p2 = scmp.lt.s32.totalorder %s223_s17, %s223_s17 }
   0x9   :  { %200 = vmatmul.mubr.bf16.vlgmr.msra.gmra.mrb[0].mxu0 %v30_v2  ;;  %p230_p3 = por %p229_p2, %p228_p1 }
   0xb   :  { %v79_v15 = vld [vmem:[#allocation2] sm:$0xff]  ;;  %v96_v29 = vld [vmem:[#allocation3] sm:$0xff]  ;;  %p231_p4 = pnand %p230_p3, %p224_p0 }
  0xdc   :  { %v73_v7 = vpop.f32.mrb[0].mxu0 }
  0xdd   :  { %v74_v8 = vadd.f32 %v73_v7, %v38_v6  ;;  %v201_v9 = vpop.f32.mrb[1].mxu0 }
  0xde   :  { %v76_v10 = vpop.f32.mrb[2].mxu0 }
  0xdf   :  { %v202_v11 = vpop.f32.mrb[3].mxu0  ;;  %v81_v12 = vsel %vm80_vm2, %v74_v8, -inf }
  0xe0   :  { %82 = vmax.xlane.f32.xlu0 %v81_v12 }
 0x16d   :  { %v83_v16 = vpop.xlane.xlu0 %82 }
 0x16e   :  { %v84_v17 = vmax.f32 %v79_v15, %v83_v16 }
 0x170   :  { %v85_v18 = vsub.f32 %v79_v15, %v84_v17  ;;  %162 = vst.msk [vmem:[#allocation2] sm:$0xff] %vm26_vm3, %v84_v17  ;;  %90 = vperm.xlu0 %215, %v84_v17  }
 0x172   :  { %v86_v27 = vmul.f32 1.442695, %v85_v18 }
 0x1ef   :  { %v91_v21 = vpop.permute.xlu0 %90 }
 0x1f0   :  { %v93_v22 = vsub.f32 %v74_v8, %v91_v21 }
 0x1f2   :  { %v94_v23 = vmul.f32 1.442695, %v93_v22 }
 0x1f4   :  { %217 = vpow2.f32 %v94_v23 }
 0x1f5   :  { %219 = vpow2.f32 %v86_v27 }
 0x1fe   :  { %v218_v24 = vpop.eup %217 }
 0x1ff   :  { %v98_v25 = vsel %vm80_vm2, %v218_v24, 0.0  ;;  %v111_v26 = vpack.c.bf16 %v218_v24, %v218_v24  ;;  %v220_v28 = vpop.eup %219 }
 0x200   :  { %99 = vadd.xlane.f32.xlu1 %v98_v25  ;;  %v97_v30 = vmul.f32 %v220_v28, %v96_v29 }
 0x201   :  { %206 = vmatmul.mubr.msk.bf16.vlgmr.msra.gmra.mrb[0].mxu1 %vm80_vm2, %v111_v26 }
 0x211   :  { %107 = vperm.xlu1 %216, %v220_v28  }
 0x28d   :  { %v100_v31 = vpop.xlane.xlu1 %99 }
 0x28e   :  { %v101_v32 = vadd.f32 %v100_v31, %v97_v30 }
 0x290   :  { %103 = vst.msk [vmem:[#allocation3] sm:$0xff] %vm26_vm3, %v101_v32 }
 0x291   :  { %v108_v39 = vpop.permute.xlu1 %107 }
 0x292   :  { %v110_v40 = vmul.f32 0.0, %v108_v39 }
 0x297   :  { %v166_v33 = vld [vmem:[#allocation3] sm:$0xff] }
 0x298   :  { %221 = vrcp.f32 %v166_v33 }
 0x2a2   :  { %v222_v34 = vpop.eup %221 }
 0x2a3   :  { %171 = vperm.xlu1 %216, %v222_v34  }
 0x2d4   :  { %v154_v35 = vpop.f32.mrb[0].mxu1 }
 0x2d5   :  { %v207_v36 = vpop.f32.mrb[1].mxu1  ;;  %v160_v41 = vadd.f32 %v154_v35, %v110_v40 }
 0x2d6   :  { %v157_v37 = vpop.f32.mrb[2].mxu1 }
 0x2d7   :  { %v208_v38 = vpop.f32.mrb[3].mxu1 }
 0x322   :  { %v172_v42 = vpop.permute.xlu1 %171 }
 0x323   :  { %v174_v43 = vmul.f32 %v172_v42, %v160_v41 }
 0x325   :  { %175 = vst [vmem:[#allocation5] sm:$0xff] %v174_v43 }
 0x326   :  { %234 = shalt.err (!%p231_p4)
}
 0x327   :  { %s235_s20 = scalar_lea.hbm %s304_s3, 128 }
 0x328   :  { %p236_p5 = scmp.ne.s32.totalorder %s304_s3, %s235_s20  ;;  %p239_p6 = scmp.lt.u32.totalorder %s235_s20, %s304_s3 }
 0x32a   :  { %p241_p7 = pnand %p239_p6, %p236_p5 }
 0x32c   :  { %244 = shalt.err (!%p241_p7)
}
 0x32d   :  { %185 = dma.vmem_to_hbm [thread:$0]  %s183_s16, 128, %s304_s3, [#allocation6]  }
 0x32e   :  { %245 = dma.done.wait [#allocation6], 128  }
 0x32f   :  { %246 = vsyncadd [#allocation6], 4294967168 }
 0x330   :  { %189 = vsyncpa [#allocation6], 1 }

// kernel: self_attention.2
= control target key start
LH: loop header
LB: loop body
LE: loop exit
PB: predicated region body
PF: predicated region fallthrough
CT: control target
= control target key end

     0   :  { %v510_v0 = vmov 0.0   ;;  %vm511_vm0 = vmmov 0   ;;  %s641_s1 = inlined_call_operand.vmem [shape: bf16[3,128,128], index: 1, kind: input, shape index: {}]   ;;  %s642_s0 = inlined_call_operand.vmem [shape: bf16[8,128], index: 0, kind: input, shape index: {}]   ;;  %s643_s2 = inlined_call_operand.vmem [shape: bf16[3,8,128], index: 2, kind: output, shape index: {}]  }
   0x1   :  { %424 = vmatprep.subr.bf16.mxu0 %v510_v0  ;;  %v486_v1 = vld [vmem:[%s641_s1] sm:$0xff]   ;;  %444 = vmatprep.subr.bf16.mxu1 %v510_v0  ;;  %v487_v2 = vld [vmem:[%s641_s1 + $0x8] sm:$0xff]   ;;  %v488_v3 = vld [vmem:[%s641_s1 + $0x10] sm:$0xff]  }
   0x2   :  { %440 = vmatprep.mubr.msk.bf16.mxu0 %vm511_vm0, %v510_v0  ;;  %460 = vmatprep.mubr.msk.bf16.mxu1 %vm511_vm0, %v510_v0  ;;  %v494_v4 = vld [vmem:[%s641_s1 + $0x40] sm:$0xff]   ;;  %v489_v5 = vld [vmem:[%s641_s1 + $0x18] sm:$0xff]   ;;  %v496_v6 = vld [vmem:[%s641_s1 + $0x48] sm:$0xff]  }
   0x3   :  { %425 = vmatpush3.bf16.msra.mxu0 %v486_v1  ;;  %445 = vmatpush3.bf16.msra.mxu1 %v494_v4  ;;  %v490_v7 = vld [vmem:[%s641_s1 + $0x20] sm:$0xff]   ;;  %v498_v8 = vld [vmem:[%s641_s1 + $0x50] sm:$0xff]   ;;  %v491_v9 = vld [vmem:[%s641_s1 + $0x28] sm:$0xff]  }
   0x4   :  { %426 = vmatprep.subr.bf16.mxu0 %v510_v0  ;;  %446 = vmatprep.subr.bf16.mxu1 %v510_v0  ;;  %v500_v10 = vld [vmem:[%s641_s1 + $0x58] sm:$0xff]   ;;  %v492_v11 = vld [vmem:[%s641_s1 + $0x30] sm:$0xff]   ;;  %v502_v12 = vld [vmem:[%s641_s1 + $0x60] sm:$0xff]  }
   0x5   :  { %v493_v13 = vld [vmem:[%s641_s1 + $0x38] sm:$0xff]   ;;  %v504_v14 = vld [vmem:[%s641_s1 + $0x68] sm:$0xff]   ;;  %v12_v15 = vld [vmem:[%s642_s0] sm:$0xf] }
   0x6   :  { %v495_v16 = vld [vmem:[%s641_s1 + $0x80] sm:$0xff]   ;;  %v506_v17 = vld [vmem:[%s641_s1 + $0x70] sm:$0xff]   ;;  %v497_v18 = vld [vmem:[%s641_s1 + $0x88] sm:$0xff]  }
   0x7   :  { %427 = vmatpush3.bf16.msra.mxu0 %v487_v2  ;;  %447 = vmatpush3.bf16.msra.mxu1 %v496_v6  ;;  %v508_v19 = vld [vmem:[%s641_s1 + $0x78] sm:$0xff]   ;;  %v499_v20 = vld [vmem:[%s641_s1 + $0x90] sm:$0xff]   ;;  %v503_v22 = vld [vmem:[%s641_s1 + $0xa0] sm:$0xff]  }
   0x8   :  { %428 = vmatprep.subr.bf16.mxu0 %v510_v0  ;;  %448 = vmatprep.subr.bf16.mxu1 %v510_v0  ;;  %v501_v21 = vld [vmem:[%s641_s1 + $0x98] sm:$0xff]   ;;  %v505_v23 = vld [vmem:[%s641_s1 + $0xa8] sm:$0xff]   ;;  %v507_v24 = vld [vmem:[%s641_s1 + $0xb0] sm:$0xff]  }
   0x9   :  { %v509_v25 = vld [vmem:[%s641_s1 + $0xb8] sm:$0xff]  }
   0xb   :  { %429 = vmatpush3.bf16.msra.mxu0 %v488_v3  ;;  %449 = vmatpush3.bf16.msra.mxu1 %v498_v8 }
   0xc   :  { %430 = vmatprep.subr.bf16.mxu0 %v510_v0  ;;  %450 = vmatprep.subr.bf16.mxu1 %v510_v0 }
   0xf   :  { %431 = vmatpush3.bf16.msra.mxu0 %v489_v5  ;;  %451 = vmatpush3.bf16.msra.mxu1 %v500_v10 }
  0x10   :  { %432 = vmatprep.subr.bf16.mxu0 %v510_v0  ;;  %452 = vmatprep.subr.bf16.mxu1 %v510_v0 }
  0x13   :  { %433 = vmatpush3.bf16.msra.mxu0 %v490_v7  ;;  %453 = vmatpush3.bf16.msra.mxu1 %v502_v12 }
  0x14   :  { %434 = vmatprep.subr.bf16.mxu0 %v510_v0  ;;  %454 = vmatprep.subr.bf16.mxu1 %v510_v0 }
  0x17   :  { %435 = vmatpush3.bf16.msra.mxu0 %v491_v9  ;;  %455 = vmatpush3.bf16.msra.mxu1 %v504_v14 }
  0x18   :  { %436 = vmatprep.subr.bf16.mxu0 %v510_v0  ;;  %456 = vmatprep.subr.bf16.mxu1 %v510_v0 }
  0x1b   :  { %437 = vmatpush3.bf16.msra.mxu0 %v492_v11  ;;  %457 = vmatpush3.bf16.msra.mxu1 %v506_v17 }
  0x1c   :  { %438 = vmatprep.subr.bf16.mxu0 %v510_v0  ;;  %458 = vmatprep.subr.bf16.mxu1 %v510_v0 }
  0x1f   :  { %439 = vmatpush3.bf16.msra.mxu0 %v493_v13  ;;  %459 = vmatpush3.bf16.msra.mxu1 %v508_v19 }
  0x20   :  { %464 = vmatprep.subr.bf16.mxu0 %v510_v0 }
  0x22   :  { %441 = vmatmul.mubr.bf16.vlgmr.msra.gmra.mrb[0].mxu0 %v12_v15  ;;  %461 = vmatmul.mubr.bf16.vlgmr.msra.gmra.mrb[0].mxu1 %v12_v15 }
  0x23   :  { %465 = vmatpush3.bf16.msra.mxu0 %v495_v16  ;;  %480 = vmatprep.mubr.msk.bf16.mxu0 %vm511_vm0, %v510_v0 }
  0x24   :  { %466 = vmatprep.subr.bf16.mxu0 %v510_v0 }
  0x27   :  { %467 = vmatpush3.bf16.msra.mxu0 %v497_v18 }
  0x28   :  { %468 = vmatprep.subr.bf16.mxu0 %v510_v0 }
  0x2b   :  { %469 = vmatpush3.bf16.msra.mxu0 %v499_v20 }
  0x2c   :  { %470 = vmatprep.subr.bf16.mxu0 %v510_v0 }
  0x2f   :  { %471 = vmatpush3.bf16.msra.mxu0 %v501_v21 }
  0x30   :  { %472 = vmatprep.subr.bf16.mxu0 %v510_v0 }
  0x33   :  { %473 = vmatpush3.bf16.msra.mxu0 %v503_v22 }
  0x34   :  { %474 = vmatprep.subr.bf16.mxu0 %v510_v0 }
  0x37   :  { %475 = vmatpush3.bf16.msra.mxu0 %v505_v23 }
  0x38   :  { %476 = vmatprep.subr.bf16.mxu0 %v510_v0 }
  0x3b   :  { %477 = vmatpush3.bf16.msra.mxu0 %v507_v24 }
  0x3c   :  { %478 = vmatprep.subr.bf16.mxu0 %v510_v0 }
  0x3f   :  { %479 = vmatpush3.bf16.msra.mxu0 %v509_v25 }
  0x42   :  { %481 = vmatmul.mubr.bf16.vlgmr.msra.gmra.mrb[4].mxu0 %v12_v15 }
  0xf5   :  { %v111_v26 = vpop.f32.mrb[0].mxu0  ;;  %v218_v31 = vpop.f32.mrb[0].mxu1 }
  0xf6   :  { %v117_v27 = vpack.c.bf16 %v111_v26, %v111_v26  ;;  %v442_v28 = vpop.f32.mrb[1].mxu0  ;;  %v224_v32 = vpack.c.bf16 %v218_v31, %v218_v31  ;;  %v462_v33 = vpop.f32.mrb[1].mxu1 }
  0xf7   :  { %v114_v29 = vpop.f32.mrb[2].mxu0  ;;  %v221_v34 = vpop.f32.mrb[2].mxu1 }
  0xf8   :  { %118 = vst [vmem:[%s643_s2] sm:$0xf] %v117_v27  ;;  %v443_v30 = vpop.f32.mrb[3].mxu0  ;;  %371 = vst [vmem:[%s643_s2 + $0x4] sm:$0xf] %v224_v32  ;;  %v463_v35 = vpop.f32.mrb[3].mxu1 }
 0x115   :  { %v326_v36 = vpop.f32.mrb[4].mxu0 }
 0x116   :  { %v332_v37 = vpack.c.bf16 %v326_v36, %v326_v36  ;;  %v482_v38 = vpop.f32.mrb[5].mxu0 }
 0x117   :  { %v329_v39 = vpop.f32.mrb[6].mxu0 }
 0x118   :  { %396 = vst [vmem:[%s643_s2 + $0x8] sm:$0xf] %v332_v37  ;;  %v483_v40 = vpop.f32.mrb[7].mxu0 }

</bundles_post_ra>
